<compile_context>
chip_gen: v7x
topology: tpu7x:2x2x1
jax: 0.10.0
libtpu: 0.0.40
codegen_flags: <defaults>
</compile_context>

<pallas_src>
from functools import partial

import jax
import jax.numpy as jnp
import numpy as np
from jax.experimental import pallas as pl
from jax.experimental.pallas import tpu as pltpu

EPS = 1e-5  # nn.InstanceNorm2d default eps


def convblock_kernel(x_ref, w_ref, o_ref, *, H, W, KH, KW):
    """One image per grid step.

    x_ref: (1, C, (H+2*pad)*W)  input, reflect-padded along H, rows flattened onto lanes
    w_ref: (KH*KW, OC, C)       conv weight, tap-major
    o_ref: (1, OC, H*W)         InstanceNorm + ReLU output (lane-dense)
    """
    C = x_ref.shape[1]
    OC = w_ref.shape[1]
    HW = H * W

    X = x_ref[0]  # (C, Hp*W)

    # Column coordinate (w) of every lane position; used to patch the reflect boundary
    # columns after the lane rolls.
    col = jax.lax.broadcasted_iota(jnp.int32, (C, HW), 1) % W
    is_first_col = col == 0
    is_last_col = col == (W - 1)

    acc = jnp.zeros((OC, HW), jnp.float32)
    for di in range(KH):
        # Rows h+di of the H-padded input, flattened: v[c, h*W + w] = x_hpad[c, h+di, w].
        v = X[:, di * W: di * W + HW]                      # (C, HW)
        r_next = jnp.roll(v, -1, axis=1)                   # v[c, i+1] (wraps across rows)
        r_prev = jnp.roll(v, 1, axis=1)                    # v[c, i-1] (wraps across rows)
        taps = (
            # dj=0: x[.., w-1]; wrap only hits w==0, where reflect wants x[.., 1] = r_next
            jnp.where(is_first_col, r_next, r_prev),
            # dj=1: x[.., w]
            v,
            # dj=2: x[.., w+1]; wrap only hits w==W-1, where reflect wants x[.., W-2] = r_prev
            jnp.where(is_last_col, r_prev, r_next),
        )
        for dj in range(KW):
            w_tap = w_ref[di * KW + dj]                    # (OC, C)
            acc = acc + jnp.dot(w_tap, taps[dj],
                                preferred_element_type=jnp.float32)

    # InstanceNorm2d (affine=False, biased variance) per channel over the spatial lanes.
    mean = jnp.mean(acc, axis=1, keepdims=True)            # (OC, 1)
    centered = acc - mean
    var = jnp.mean(centered * centered, axis=1, keepdims=True)
    y = centered * jax.lax.rsqrt(var + EPS)

    o_ref[0] = jnp.maximum(y, 0.0).astype(o_ref.dtype)     # ReLU


def convolutional_block(x, weight, bias=None):
    """x: (N, C, H, W) NCHW.  weight: (OC, C, 3, 3).  bias: (OC,) -- accepted for
    interface parity but unused: InstanceNorm's mean subtraction cancels it exactly.
    Conv2d(kernel=3, stride=1, padding=1, padding_mode='reflect') + InstanceNorm2d + ReLU.
    Returns (N, OC, H, W)."""
    del bias  # cancelled by InstanceNorm (affine=False)

    n, c, h, w = x.shape
    oc, ic, kh, kw = weight.shape
    assert ic == c and kh == 3 and kw == 3
    pad = kh // 2
    hp = h + 2 * pad
    hw = h * w

    # Reflect-pad along H only (the W reflection is handled in-kernel via lane rolls),
    # then flatten rows so spatial positions sit on the lane axis.
    x_hpad = jnp.pad(x, ((0, 0), (0, 0), (pad, pad), (0, 0)), mode="reflect")
    x_flat = x_hpad.reshape(n, c, hp * w)                  # (N, C, Hp*W)

    # Tap-major weight: w_taps[di*KW+dj] = weight[:, :, di, dj] with shape (OC, C).
    w_taps = jnp.transpose(weight, (2, 3, 0, 1)).reshape(kh * kw, oc, c)

    kernel = partial(convblock_kernel, H=h, W=w, KH=kh, KW=kw)

    out = pl.pallas_call(
        kernel,
        out_shape=jax.ShapeDtypeStruct((n, oc, hw), x.dtype),
        grid_spec=pltpu.PrefetchScalarGridSpec(
            num_scalar_prefetch=0,
            grid=(n,),
            in_specs=[
                pl.BlockSpec((1, c, hp * w), lambda b: (b, 0, 0)),
                pl.BlockSpec((kh * kw, oc, c), lambda b: (0, 0, 0)),
            ],
            out_specs=pl.BlockSpec((1, oc, hw), lambda b: (b, 0, 0)),
        ),
        compiler_params=pltpu.CompilerParams(
            dimension_semantics=("parallel",),
        ),
    )(x_flat, w_taps)

    # (N, OC, HW) -> (N, OC, H, W): pure reshape, no transpose.
    return out.reshape(n, oc, h, w)


def _reference(x, weight, bias):
    """Pure-JAX reference matching PyTorch semantics (includes the bias, which must cancel)."""
    pad = weight.shape[2] // 2
    x_pad = jnp.pad(x, ((0, 0), (0, 0), (pad, pad), (pad, pad)), mode="reflect")
    y = jax.lax.conv_general_dilated(
        x_pad, weight, window_strides=(1, 1), padding="VALID",
        dimension_numbers=("NCHW", "OIHW", "NCHW"))
    y = y + bias.reshape(1, -1, 1, 1)
    mean = jnp.mean(y, axis=(2, 3), keepdims=True)
    var = jnp.mean((y - mean) ** 2, axis=(2, 3), keepdims=True)
    y = (y - mean) / jnp.sqrt(var + EPS)
    return jnp.maximum(y, 0.0)


if __name__ == "__main__":
    # ConvolutionalBlock(in_channels=4, out_channels=8, use_relu=True, downsampling=True,
    #                    kernel_size=3, stride=1, padding=1)
    N, C, H, W = 2, 4, 16, 16
    OC, KH, KW = 8, 3, 3

    key = jax.random.PRNGKey(0)
    kx, kw_, kb = jax.random.split(key, 3)
    x = jax.random.normal(kx, (N, C, H, W), dtype=jnp.float32)
    fan_in = C * KH * KW
    weight = jax.random.uniform(kw_, (OC, C, KH, KW), dtype=jnp.float32,
                                minval=-1.0, maxval=1.0) / np.sqrt(fan_in)
    bias = jax.random.uniform(kb, (OC,), dtype=jnp.float32,
                              minval=-1.0, maxval=1.0) / np.sqrt(fan_in)

    out = convolutional_block(x, weight, bias)
    out = jax.block_until_ready(out)

    ref = jax.block_until_ready(_reference(x, weight, bias))
    np.testing.assert_allclose(np.asarray(out), np.asarray(ref), atol=2e-2, rtol=2e-2)

    print("KERNEL_OK")
</pallas_src>

<mosaic_0001>
module attributes {stable_mosaic.version = 11 : i64} {
  func.func @convblock_kernel(%arg0: i32, %arg1: memref<1x4x288xf32, #tpu.memory_space<vmem>>, %arg2: memref<9x8x4xf32, #tpu.memory_space<vmem>>, %arg3: memref<1x8x256xf32, #tpu.memory_space<vmem>>) attributes {dimension_semantics = [#tpu.dimension_semantics<parallel>], iteration_bounds = array<i64: 2>, scalar_prefetch = 0 : i64, scratch_operands = 0 : i64, tpu.core_type = #tpu.core_type<tc>, window_params = [{transform_indices = @transform_0, window_bounds = array<i64: 1, 4, 288>}, {pipeline_mode = #tpu.pipeline_mode<synchronous>, transform_indices = @transform_1, window_bounds = array<i64: 9, 8, 4>}, {transform_indices = @transform_2, window_bounds = array<i64: 1, 8, 256>}]} {
    %c0 = arith.constant 0 : index
    %c0_0 = arith.constant 0 : index
    %c0_1 = arith.constant 0 : index
    %0 = vector.load %arg1[%c0, %c0_0, %c0_1] : memref<1x4x288xf32, #tpu.memory_space<vmem>>, vector<1x4x288xf32>
    %1 = vector.shape_cast %0 : vector<1x4x288xf32> to vector<4x288xf32>
    %2 = tpu.iota {dimensions = array<i32: 1>} : vector<4x256xi32>
    %c16_i32 = arith.constant 16 : i32
    %c0_i32 = arith.constant 0 : i32
    %3 = arith.cmpi eq, %c16_i32, %c0_i32 : i32
    %c1_i32 = arith.constant 1 : i32
    %4 = arith.select %3, %c1_i32, %c16_i32 : i32
    %5 = vector.broadcast %4 : i32 to vector<4x256xi32>
    %6 = arith.remsi %2, %5 : vector<4x256xi32>
    %c0_i32_2 = arith.constant 0 : i32
    %7 = vector.broadcast %c0_i32_2 : i32 to vector<4x256xi32>
    %8 = arith.cmpi ne, %6, %7 : vector<4x256xi32>
    %c0_i32_3 = arith.constant 0 : i32
    %9 = vector.broadcast %c0_i32_3 : i32 to vector<4x256xi32>
    %10 = arith.cmpi slt, %6, %9 : vector<4x256xi32>
    %c0_i32_4 = arith.constant 0 : i32
    %11 = arith.cmpi slt, %4, %c0_i32_4 : i32
    %12 = vector.broadcast %11 : i1 to vector<4x256xi1>
    %13 = vector.broadcast %12 : vector<4x256xi1> to vector<4x256xi1>
    %14 = arith.xori %10, %13 : vector<4x256xi1>
    %15 = arith.andi %14, %8 : vector<4x256xi1>
    %16 = vector.broadcast %4 : i32 to vector<4x256xi32>
    %17 = arith.addi %6, %16 : vector<4x256xi32>
    %18 = arith.select %15, %17, %6 : vector<4x256xi1>, vector<4x256xi32>
    %c0_i32_5 = arith.constant 0 : i32
    %19 = vector.broadcast %c0_i32_5 : i32 to vector<4x256xi32>
    %20 = arith.cmpi eq, %18, %19 : vector<4x256xi32>
    %c15_i32 = arith.constant 15 : i32
    %21 = vector.broadcast %c15_i32 : i32 to vector<4x256xi32>
    %22 = arith.cmpi eq, %18, %21 : vector<4x256xi32>
    %cst = arith.constant 0.000000e+00 : f32
    %23 = vector.broadcast %cst : f32 to vector<8x256xf32>
    %24 = vector.extract_strided_slice %1 {offsets = [0, 0], sizes = [4, 256], strides = [1, 1]} : vector<4x288xf32> to vector<4x256xf32>
    %25 = vector.extract_strided_slice %24 {offsets = [0, 1], sizes = [4, 255], strides = [1, 1]} : vector<4x256xf32> to vector<4x255xf32>
    %26 = vector.extract_strided_slice %24 {offsets = [0, 0], sizes = [4, 1], strides = [1, 1]} : vector<4x256xf32> to vector<4x1xf32>
    %27 = tpu.concatenate %25, %26 in 1 : vector<4x255xf32>, vector<4x1xf32> -> vector<4x256xf32>
    %28 = vector.extract_strided_slice %24 {offsets = [0, 255], sizes = [4, 1], strides = [1, 1]} : vector<4x256xf32> to vector<4x1xf32>
    %29 = vector.extract_strided_slice %24 {offsets = [0, 0], sizes = [4, 255], strides = [1, 1]} : vector<4x256xf32> to vector<4x255xf32>
    %30 = tpu.concatenate %28, %29 in 1 : vector<4x1xf32>, vector<4x255xf32> -> vector<4x256xf32>
    %31 = arith.select %20, %27, %30 : vector<4x256xi1>, vector<4x256xf32>
    %32 = arith.select %22, %30, %27 : vector<4x256xi1>, vector<4x256xf32>
    %c0_6 = arith.constant 0 : index
    %c0_7 = arith.constant 0 : index
    %c0_8 = arith.constant 0 : index
    %33 = vector.load %arg2[%c0_6, %c0_7, %c0_8] : memref<9x8x4xf32, #tpu.memory_space<vmem>>, vector<1x8x4xf32>
    %34 = vector.shape_cast %33 : vector<1x8x4xf32> to vector<8x4xf32>
    %cst_9 = arith.constant dense<0.000000e+00> : vector<8x256xf32>
    %35 = tpu.matmul %34, %31, %cst_9 {dimension_numbers = #tpu.dot_dimension_numbers<[1], [0], [0], [1], [0, 0, 1, 1], [], []>} : vector<8x4xf32>, vector<4x256xf32>, vector<8x256xf32> -> vector<8x256xf32>
    %36 = arith.addf %23, %35 : vector<8x256xf32>
    %c1 = arith.constant 1 : index
    %c0_10 = arith.constant 0 : index
    %c0_11 = arith.constant 0 : index
    %37 = vector.load %arg2[%c1, %c0_10, %c0_11] : memref<9x8x4xf32, #tpu.memory_space<vmem>>, vector<1x8x4xf32>
    %38 = vector.shape_cast %37 : vector<1x8x4xf32> to vector<8x4xf32>
    %cst_12 = arith.constant dense<0.000000e+00> : vector<8x256xf32>
    %39 = tpu.matmul %38, %24, %cst_12 {dimension_numbers = #tpu.dot_dimension_numbers<[1], [0], [0], [1], [0, 0, 1, 1], [], []>} : vector<8x4xf32>, vector<4x256xf32>, vector<8x256xf32> -> vector<8x256xf32>
    %40 = arith.addf %36, %39 : vector<8x256xf32>
    %c2 = arith.constant 2 : index
    %c0_13 = arith.constant 0 : index
    %c0_14 = arith.constant 0 : index
    %41 = vector.load %arg2[%c2, %c0_13, %c0_14] : memref<9x8x4xf32, #tpu.memory_space<vmem>>, vector<1x8x4xf32>
    %42 = vector.shape_cast %41 : vector<1x8x4xf32> to vector<8x4xf32>
    %cst_15 = arith.constant dense<0.000000e+00> : vector<8x256xf32>
    %43 = tpu.matmul %42, %32, %cst_15 {dimension_numbers = #tpu.dot_dimension_numbers<[1], [0], [0], [1], [0, 0, 1, 1], [], []>} : vector<8x4xf32>, vector<4x256xf32>, vector<8x256xf32> -> vector<8x256xf32>
    %44 = arith.addf %40, %43 : vector<8x256xf32>
    %45 = vector.extract_strided_slice %1 {offsets = [0, 16], sizes = [4, 256], strides = [1, 1]} : vector<4x288xf32> to vector<4x256xf32>
    %46 = vector.extract_strided_slice %45 {offsets = [0, 1], sizes = [4, 255], strides = [1, 1]} : vector<4x256xf32> to vector<4x255xf32>
    %47 = vector.extract_strided_slice %45 {offsets = [0, 0], sizes = [4, 1], strides = [1, 1]} : vector<4x256xf32> to vector<4x1xf32>
    %48 = tpu.concatenate %46, %47 in 1 : vector<4x255xf32>, vector<4x1xf32> -> vector<4x256xf32>
    %49 = vector.extract_strided_slice %45 {offsets = [0, 255], sizes = [4, 1], strides = [1, 1]} : vector<4x256xf32> to vector<4x1xf32>
    %50 = vector.extract_strided_slice %45 {offsets = [0, 0], sizes = [4, 255], strides = [1, 1]} : vector<4x256xf32> to vector<4x255xf32>
    %51 = tpu.concatenate %49, %50 in 1 : vector<4x1xf32>, vector<4x255xf32> -> vector<4x256xf32>
    %52 = arith.select %20, %48, %51 : vector<4x256xi1>, vector<4x256xf32>
    %53 = arith.select %22, %51, %48 : vector<4x256xi1>, vector<4x256xf32>
    %c3 = arith.constant 3 : index
    %c0_16 = arith.constant 0 : index
    %c0_17 = arith.constant 0 : index
    %54 = vector.load %arg2[%c3, %c0_16, %c0_17] : memref<9x8x4xf32, #tpu.memory_space<vmem>>, vector<1x8x4xf32>
    %55 = vector.shape_cast %54 : vector<1x8x4xf32> to vector<8x4xf32>
    %cst_18 = arith.constant dense<0.000000e+00> : vector<8x256xf32>
    %56 = tpu.matmul %55, %52, %cst_18 {dimension_numbers = #tpu.dot_dimension_numbers<[1], [0], [0], [1], [0, 0, 1, 1], [], []>} : vector<8x4xf32>, vector<4x256xf32>, vector<8x256xf32> -> vector<8x256xf32>
    %57 = arith.addf %44, %56 : vector<8x256xf32>
    %c4 = arith.constant 4 : index
    %c0_19 = arith.constant 0 : index
    %c0_20 = arith.constant 0 : index
    %58 = vector.load %arg2[%c4, %c0_19, %c0_20] : memref<9x8x4xf32, #tpu.memory_space<vmem>>, vector<1x8x4xf32>
    %59 = vector.shape_cast %58 : vector<1x8x4xf32> to vector<8x4xf32>
    %cst_21 = arith.constant dense<0.000000e+00> : vector<8x256xf32>
    %60 = tpu.matmul %59, %45, %cst_21 {dimension_numbers = #tpu.dot_dimension_numbers<[1], [0], [0], [1], [0, 0, 1, 1], [], []>} : vector<8x4xf32>, vector<4x256xf32>, vector<8x256xf32> -> vector<8x256xf32>
    %61 = arith.addf %57, %60 : vector<8x256xf32>
    %c5 = arith.constant 5 : index
    %c0_22 = arith.constant 0 : index
    %c0_23 = arith.constant 0 : index
    %62 = vector.load %arg2[%c5, %c0_22, %c0_23] : memref<9x8x4xf32, #tpu.memory_space<vmem>>, vector<1x8x4xf32>
    %63 = vector.shape_cast %62 : vector<1x8x4xf32> to vector<8x4xf32>
    %cst_24 = arith.constant dense<0.000000e+00> : vector<8x256xf32>
    %64 = tpu.matmul %63, %53, %cst_24 {dimension_numbers = #tpu.dot_dimension_numbers<[1], [0], [0], [1], [0, 0, 1, 1], [], []>} : vector<8x4xf32>, vector<4x256xf32>, vector<8x256xf32> -> vector<8x256xf32>
    %65 = arith.addf %61, %64 : vector<8x256xf32>
    %66 = vector.extract_strided_slice %1 {offsets = [0, 32], sizes = [4, 256], strides = [1, 1]} : vector<4x288xf32> to vector<4x256xf32>
    %67 = vector.extract_strided_slice %66 {offsets = [0, 1], sizes = [4, 255], strides = [1, 1]} : vector<4x256xf32> to vector<4x255xf32>
    %68 = vector.extract_strided_slice %66 {offsets = [0, 0], sizes = [4, 1], strides = [1, 1]} : vector<4x256xf32> to vector<4x1xf32>
    %69 = tpu.concatenate %67, %68 in 1 : vector<4x255xf32>, vector<4x1xf32> -> vector<4x256xf32>
    %70 = vector.extract_strided_slice %66 {offsets = [0, 255], sizes = [4, 1], strides = [1, 1]} : vector<4x256xf32> to vector<4x1xf32>
    %71 = vector.extract_strided_slice %66 {offsets = [0, 0], sizes = [4, 255], strides = [1, 1]} : vector<4x256xf32> to vector<4x255xf32>
    %72 = tpu.concatenate %70, %71 in 1 : vector<4x1xf32>, vector<4x255xf32> -> vector<4x256xf32>
    %73 = arith.select %20, %69, %72 : vector<4x256xi1>, vector<4x256xf32>
    %74 = arith.select %22, %72, %69 : vector<4x256xi1>, vector<4x256xf32>
    %c6 = arith.constant 6 : index
    %c0_25 = arith.constant 0 : index
    %c0_26 = arith.constant 0 : index
    %75 = vector.load %arg2[%c6, %c0_25, %c0_26] : memref<9x8x4xf32, #tpu.memory_space<vmem>>, vector<1x8x4xf32>
    %76 = vector.shape_cast %75 : vector<1x8x4xf32> to vector<8x4xf32>
    %cst_27 = arith.constant dense<0.000000e+00> : vector<8x256xf32>
    %77 = tpu.matmul %76, %73, %cst_27 {dimension_numbers = #tpu.dot_dimension_numbers<[1], [0], [0], [1], [0, 0, 1, 1], [], []>} : vector<8x4xf32>, vector<4x256xf32>, vector<8x256xf32> -> vector<8x256xf32>
    %78 = arith.addf %65, %77 : vector<8x256xf32>
    %c7 = arith.constant 7 : index
    %c0_28 = arith.constant 0 : index
    %c0_29 = arith.constant 0 : index
    %79 = vector.load %arg2[%c7, %c0_28, %c0_29] : memref<9x8x4xf32, #tpu.memory_space<vmem>>, vector<1x8x4xf32>
    %80 = vector.shape_cast %79 : vector<1x8x4xf32> to vector<8x4xf32>
    %cst_30 = arith.constant dense<0.000000e+00> : vector<8x256xf32>
    %81 = tpu.matmul %80, %66, %cst_30 {dimension_numbers = #tpu.dot_dimension_numbers<[1], [0], [0], [1], [0, 0, 1, 1], [], []>} : vector<8x4xf32>, vector<4x256xf32>, vector<8x256xf32> -> vector<8x256xf32>
    %82 = arith.addf %78, %81 : vector<8x256xf32>
    %c8 = arith.constant 8 : index
    %c0_31 = arith.constant 0 : index
    %c0_32 = arith.constant 0 : index
    %83 = vector.load %arg2[%c8, %c0_31, %c0_32] : memref<9x8x4xf32, #tpu.memory_space<vmem>>, vector<1x8x4xf32>
    %84 = vector.shape_cast %83 : vector<1x8x4xf32> to vector<8x4xf32>
    %cst_33 = arith.constant dense<0.000000e+00> : vector<8x256xf32>
    %85 = tpu.matmul %84, %74, %cst_33 {dimension_numbers = #tpu.dot_dimension_numbers<[1], [0], [0], [1], [0, 0, 1, 1], [], []>} : vector<8x4xf32>, vector<4x256xf32>, vector<8x256xf32> -> vector<8x256xf32>
    %86 = arith.addf %82, %85 : vector<8x256xf32>
    %cst_34 = arith.constant dense<0.000000e+00> : vector<8xf32>
    %87 = vector.multi_reduction <add>, %86, %cst_34 [1] : vector<8x256xf32> to vector<8xf32>
    %88 = vector.shape_cast %87 : vector<8xf32> to vector<8x1xf32>
    %cst_35 = arith.constant 2.560000e+02 : f32
    %89 = vector.broadcast %cst_35 : f32 to vector<8x1xf32>
    %90 = arith.divf %88, %89 : vector<8x1xf32>
    %91 = vector.broadcast %90 : vector<8x1xf32> to vector<8x256xf32>
    %92 = arith.subf %86, %91 : vector<8x256xf32>
    %93 = arith.mulf %92, %92 : vector<8x256xf32>
    %cst_36 = arith.constant dense<0.000000e+00> : vector<8xf32>
    %94 = vector.multi_reduction <add>, %93, %cst_36 [1] : vector<8x256xf32> to vector<8xf32>
    %95 = vector.shape_cast %94 : vector<8xf32> to vector<8x1xf32>
    %cst_37 = arith.constant 2.560000e+02 : f32
    %96 = vector.broadcast %cst_37 : f32 to vector<8x1xf32>
    %97 = arith.divf %95, %96 : vector<8x1xf32>
    %cst_38 = arith.constant 9.99999974E-6 : f32
    %98 = vector.broadcast %cst_38 : f32 to vector<8x1xf32>
    %99 = arith.addf %97, %98 : vector<8x1xf32>
    %100 = math.rsqrt %99 : vector<8x1xf32>
    %101 = vector.broadcast %100 : vector<8x1xf32> to vector<8x256xf32>
    %102 = arith.mulf %92, %101 : vector<8x256xf32>
    %cst_39 = arith.constant 0.000000e+00 : f32
    %103 = vector.broadcast %cst_39 : f32 to vector<8x256xf32>
    %104 = arith.maximumf %102, %103 : vector<8x256xf32>
    %c0_40 = arith.constant 0 : index
    %c0_41 = arith.constant 0 : index
    %c0_42 = arith.constant 0 : index
    %105 = vector.load %arg3[%c0_40, %c0_41, %c0_42] : memref<1x8x256xf32, #tpu.memory_space<vmem>>, vector<1x8x256xf32>
    %106 = vector.shape_cast %105 : vector<1x8x256xf32> to vector<8x256xf32>
    %107 = vector.shape_cast %104 : vector<8x256xf32> to vector<1x8x256xf32>
    tpu.vector_store %arg3[%c0_40, %c0_41, %c0_42], %107 {strides = array<i32>} : memref<1x8x256xf32, #tpu.memory_space<vmem>>, vector<1x8x256xf32>,
    return
  }
  func.func @transform_0(%arg0: i32) -> (i32, i32, i32) {
    %c0_i32 = arith.constant 0 : i32
    %c0_i32_0 = arith.constant 0 : i32
    %c0_i32_1 = arith.constant 0 : i32
    return %arg0, %c0_i32, %c0_i32_0 : i32, i32, i32
  }
  func.func @transform_1(%arg0: i32) -> (i32, i32, i32) {
    %c0_i32 = arith.constant 0 : i32
    %c0_i32_0 = arith.constant 0 : i32
    %c0_i32_1 = arith.constant 0 : i32
    %c0_i32_2 = arith.constant 0 : i32
    return %c0_i32, %c0_i32_0, %c0_i32_1 : i32, i32, i32
  }
  func.func @transform_2(%arg0: i32) -> (i32, i32, i32) {
    %c0_i32 = arith.constant 0 : i32
    %c0_i32_0 = arith.constant 0 : i32
    %c0_i32_1 = arith.constant 0 : i32
    return %arg0, %c0_i32, %c0_i32_0 : i32, i32, i32
  }
}

</mosaic_0001>

<bundles_post_ra>
// kernel: tpu_custom_call.1
= control target key start
LH: loop header
LB: loop body
LE: loop exit
PB: predicated region body
PF: predicated region fallthrough
CT: control target
= control target key end

     0   :  { %7 = vsyncpa [#allocation3], 0  ;;  %s1539_s0 = inlined_call_operand.vmem [shape: f32[2,4,288], index: 0, kind: input, shape index: {}]   ;;  %s1540_s1 = inlined_call_operand.vmem [shape: f32[9,8,4], index: 1, kind: input, shape index: {}]   ;;  %s1541_s2 = inlined_call_operand.hbm [shape: f32[2,8,256], index: 2, kind: output, shape index: {}]  }
   0x1   :  { %9 = vsyncpa [#allocation3 + $0x1], 0  ;;  %s1326_s9 = smov 0   ;;  %s1328_s10 = smov 0  }
   0x2   :  { %s1330_s11 = smov 0   ;;  %s1332_s12 = smov 0  }
   0x3 LB: > { %s1347_s13 = sadd.s32 4294967295, %s1299_s12   ;;  %s1122_s14 = sadd.s32 4294967294, %s1299_s12   ;;  %s1299_s12 = sphi %s1332_s12, %s1555_s12   ;;  %s1295_s11 = sphi %s1330_s11, %s1554_s11   ;;  %s1291_s10 = sphi %s1328_s10, %s1553_s10   ;;  %s1287_s9 = sphi %s1326_s9, %s1552_s9  }
   0x4   : > { %s1351_s15 = sadd.s32 1, %s1299_s12   ;;  %s69_s16 = sadd.s32 1, %s1295_s11 }
   0x5   : > { %s66_s17 = ssub.s32 %s1299_s12, %s1351_s15  ;;  %p79_p0 = scmp.ne.s32.totalorder %s1295_s11, %s1291_s10 }
   0x6   : > { %p67_p1 = scmp.eq.s32.totalorder %s66_s17, 0  ;;  %p80_p2 = scmp.eq.s32.totalorder %s1347_s13, 1 }
   0x7   : > { %p85_p3 = scmp.ne.s32.totalorder %s1291_s10, %s1287_s9  ;;  %p86_p4 = scmp.eq.s32.totalorder %s1122_s14, 1 }
   0x8   : > { %s1362_s18 = scalar_select %p67_p1, %s1295_s11, %s69_s16  }
   0x9   : > { %p1364_p5 = por %p80_p2, %p79_p0  ;;  %p1368_p6 = por %p86_p4, %p85_p3 }
   0xa   : > { %p1125_p7 = scmp.ge.s32.totalorder %s1299_s12, 1  ;;  %p115_p8 = scmp.lt.s32.totalorder %s1299_s12, 3 }
   0xc   : > { %p116_p9 = pnand %p1125_p7, %p115_p8 }
   0xd   : > { %p137_p10 = scmp.lt.s32.totalorder (!%p116_p9), %s1347_s13, 1  ;;  %s1301_s26 = smov (!%p116_p9), 112   ;;  %vm208_vm0 = vcmask (!%p116_p9), 1043456   ;;  %v1303_v3 = vmov (!%p116_p9), 0.0   ;;  %vm204_vm1 = vcmask (!%p116_p9), 31744   ;;  %v1128_v4 = vld [vmem:[%s1540_s1 + $0x8] sm:$0xff] (!%p116_p9)  ;;  %v144_v5 = vlaneseq (!%p116_p9) }
   0xe   : > { %119 = sbr.rel (%p116_p9) target bundleno = 740 (0x2e4), region = 28  ;;  %s1302_s27 = smov (!%p116_p9), 111   ;;  %645 = vmatprep.mubr.f32.mxu0 (!%p116_p9), %v1303_v3  ;;  %277 = vmatprep.mubr.f32.mxu1 (!%p116_p9), %v1303_v3  ;;  %vm571_vm2 = vcmask (!%p116_p9), 916480   ;;  %v1143_v16 = vld [vmem:[%s1540_s1 + $0x20] sm:$0xff] (!%p116_p9)  ;;  %vm455_vm3 = vcmask (!%p116_p9), 908288   ;;  %vm181_vm4 = vcmask (!%p116_p9), 1039360  }
   0xf   : > { %s1304_s30 = smov (!%p116_p9), 113   ;;  %s1305_s3 = smov (!%p116_p9), 95   ;;  %v145_v8 = vand.u32 (!%p116_p9), 127, %v144_v5  ;;  %vm469_vm5 = vcmask (!%p116_p9), 924672   ;;  %vm192_vm6 = vcmask (!%p116_p9), 7168   ;;  %v1147_v32 = vld [vmem:[%s1540_s1 + $0x28] sm:$0xff] (!%p116_p9) }
  0x10   : > { %s1306_s4 = smov (!%p116_p9), 127   ;;  %s1307_s5 = smov (!%p116_p9), 1   ;;  %v201_v48 = vld [vmem:[%s1540_s1] sm:$0xff] (!%p116_p9)  ;;  %vm744_vm11 = vcmask (!%p116_p9), 777216   ;;  %vm758_vm12 = vcmask (!%p116_p9), 793600   ;;  %vm860_vm13 = vcmask (!%p116_p9), 785408  }
  0x11   : > { %s1308_s6 = smov (!%p116_p9), 97   ;;  %s1309_s7 = smov (!%p116_p9), 96   ;;  %v146_v11 = vadd.s32 (!%p116_p9), 128, %v145_v8  ;;  %v151_v20 = vand.u32 (!%p116_p9), 15, %v145_v8  ;;  %v1135_v63 = vld [vmem:[%s1540_s1 + $0x10] sm:$0xff] (!%p116_p9) }
  0x12   : > { %s1310_s23 = smov (!%p116_p9), [#allocation2]  }
  0x13   : > { %v158_v17 = vand.u32 (!%p116_p9), 15, %v146_v11  ;;  %vm1400_vm8 = vcmp.eq.s32.totalorder (!%p116_p9), %v151_v20, 15  ;;  %vm1418_vm9 = vcmp.eq.s32.totalorder (!%p116_p9), %v151_v20, 0  ;;  %s1241_s24 = sshll.u32 (!%p116_p9), %s1310_s23, 4  ;;  %s1242_s24 = int_to_ptr.vmem [resolvable:$false] %s1241_s24 }
  0x15   : > { %s138_s21 = scalar_select %p137_p10, %s1347_s13, 1  ;;  %vm1396_vm7 = vcmp.eq.s32.totalorder %v158_v17, 15  ;;  %vm1422_vm10 = vcmp.eq.s32.totalorder %v158_v17, 0 }
  0x17   : > { %s1185_s22 = smul.u32 12, %s138_s21 }
  0x19   : > { %s141_s25 = scalar_lea.vmem %s1539_s0, %s1185_s22 }
  0x1a   : > { %v143_v0 = vld [vmem:[%s141_s25 + $0x8] sm:$0xf]  ;;  %v142_v1 = vld [vmem:[%s141_s25] sm:$0xff]  ;;  %s1243_s25 = scalar_lea.vmem %s1242_s24, 512 }
  0x1b   : > { %569 = vrot.lane.b32.xlu0 %v143_v0, %s1301_s26  ;;  %v176_v2 = vcombine.high %v142_v1, %v142_v1  ;;  %565 = vrot.lane.b32.xlu1 %v142_v1, %s1301_s26 }
  0x1d   : > { %1129 = vmatprep.subr.msk.mxu1 %vm208_vm0, %v176_v2 }
  0x1e   : > { %1130 = vmatpush1.msk.msra.mxu1 %vm208_vm0, %v142_v1 }
  0x1f   : > { %453 = vrot.lane.b32.xlu0 %v143_v0, %s1302_s27  ;;  %449 = vrot.lane.b32.xlu1 %v142_v1, %s1302_s27 }
  0x20   : > { %1131 = vmatmul.mubr.msk.f32.vlgmr.msra.gmra.mrb[0].mxu1 %vm204_vm1, %v1128_v4 }
  0x21   : > { %357 = vmatprep.mubr.f32.mxu1 %v1303_v3 }
  0x23   : > { %451 = vrot.lane.b32.xlu1 %v176_v2, %s1302_s27  ;;  %567 = vrot.lane.b32.xlu0 %v176_v2, %s1301_s26 }
  0x27   : > { %465 = vrot.lane.b32.xlu1 %v142_v1, %s1304_s30  ;;  %462 = vrot.lane.b32.xlu0 %v143_v0, %s1304_s30 }
  0x2b   : > { %740 = vrot.lane.b32.xlu1 %v176_v2, %s1305_s3  ;;  %467 = vrot.lane.b32.xlu0 %v176_v2, %s1304_s30 }
  0x2f   : > { %177 = vrot.lane.b32.xlu1 %v142_v1, %s1306_s4  ;;  %742 = vrot.lane.b32.xlu0 %v143_v0, %s1305_s3 }
  0x33   : > { %187 = vrot.lane.b32.xlu1 %v176_v2, %s1307_s5  ;;  %179 = vrot.lane.b32.xlu0 %v176_v2, %s1306_s4 }
  0x37   : > { %738 = vrot.lane.b32.xlu1 %v142_v1, %s1305_s3  ;;  %190 = vrot.lane.b32.xlu0 %v142_v1, %s1307_s5  ;;  %s134_s5 = sand.u32 1, %s1291_s10  }
  0x38   : > { %s1049_s22 = scalar_lea.sflag [#allocation3], %s134_s5 }
  0x3b   : > { %751 = vrot.lane.b32.xlu0 %v143_v0, %s1308_s6  ;;  %754 = vrot.lane.b32.xlu1 %v142_v1, %s1308_s6 }
  0x3f   : > { %756 = vrot.lane.b32.xlu0 %v176_v2, %s1308_s6  ;;  %856 = vrot.lane.b32.xlu1 %v176_v2, %s1309_s7  ;;  %s1126_s6 = sshll.u32 %s134_s5, 4 }
  0x40   : > { %s136_s8 = scalar_lea.vmem [#allocation2], %s1126_s6 }
  0x41   : > { %s1063_s14 = sshll.u32 %s136_s8, 4  ;;  %s1499_s14 = int_to_ptr.vmem [resolvable:$true] %s1063_s14 }
  0x42   : > { %p1244_p0 = scmp.lt.s32.totalorder %s1499_s14, %s1242_s24 }
  0x43   : > { %858 = vrot.lane.b32.xlu0 %v143_v0, %s1309_s7  ;;  %854 = vrot.lane.b32.xlu1 %v142_v1, %s1309_s7  ;;  %v1151_v0 = vld [vmem:[%s1540_s1 + $0x30] sm:$0xff]  ;;  %s1168_s7 = sshll.u32 %s1347_s13, 8  ;;  %s1237_s13 = scalar_lea.vmem %s1499_s14, 256 }
  0x44   : > { %s1497_s21 = scalar_lea.hbm %s1541_s2, %s1168_s7  ;;  %p1238_p11 = scmp.ne.s32.totalorder %s1499_s14, %s1237_s13 }
  0x45   : > { %p1245_p1 = scmp.lt.s32.totalorder %s1243_s25, %s1237_s13 }
  0x46   : > { %p1239_p12 = pnand %p1238_p11, %p1364_p5 }
  0x47   : > { %p1246_p2 = por %p1245_p1, %p1244_p0 }
  0x48   : > { %p1240_p13 = pneg %p1239_p12 }
  0x4a   : > { %p1247_p3 = pnand %p1246_p2, %p1240_p13 }
  0x8d   : > { %v570_v6 = vpop.permute.xlu0 %569  ;;  %v566_v7 = vpop.permute.xlu1 %565 }
  0x91   : > { %v454_v9 = vpop.permute.xlu0 %453  ;;  %v450_v10 = vpop.permute.xlu1 %449 }
  0x95   : > { %v452_v12 = vpop.permute.xlu1 %451  ;;  %v568_v13 = vpop.permute.xlu0 %567 }
  0x96   : > { %v573_v14 = vsel %vm571_vm2, %v568_v13, %v570_v6  ;;  %v572_v15 = vsel %vm571_vm2, %v566_v7, %v568_v13  ;;  %v457_v21 = vsel %vm455_vm3, %v452_v12, %v454_v9  ;;  %v456_v29 = vsel %vm455_vm3, %v450_v10, %v452_v12  ;;  %v1139_v9 = vld [vmem:[%s1540_s1 + $0x18] sm:$0xff]  ;;  %v1159_v12 = vld [vmem:[%s1540_s1 + $0x40] sm:$0xff] }
  0x97   : > { %1144 = vmatprep.subr.msk.mxu0 %vm208_vm0, %v573_v14  ;;  %v461_v26 = vsel %vm181_vm4, %v457_v21, %v450_v10  ;;  %v1155_v10 = vld [vmem:[%s1540_s1 + $0x38] sm:$0xff] }
  0x98   : > { %1145 = vmatpush1.msk.msra.mxu0 %vm208_vm0, %v572_v15 }
  0x99   : > { %v466_v18 = vpop.permute.xlu1 %465  ;;  %v463_v19 = vpop.permute.xlu0 %462  ;;  %1146 = vmatmul.mubr.msk.f32.vlgmr.msra.gmra.mrb[0].mxu0 %vm204_vm1, %v1143_v16 }
  0x9a   : > { %729 = vmatprep.mubr.f32.mxu0 %v1303_v3 }
  0x9d   : > { %v741_v23 = vpop.permute.xlu1 %740  ;;  %v468_v24 = vpop.permute.xlu0 %467 }
  0x9e   : > { %v470_v27 = vsel %vm469_vm5, %v466_v18, %v468_v24  ;;  %v471_v28 = vsel %vm469_vm5, %v468_v24, %v463_v19 }
  0x9f   : > { %v474_v30 = vsel %vm192_vm6, %v463_v19, %v470_v27  ;;  %v478_v31 = vsel %vm1396_vm7, %v471_v28, %v461_v26  ;;  %v476_v53 = vsel %vm1422_vm10, %v461_v26, %v471_v28 }
  0xa0   : > { %1148 = vmatprep.subr.msk.mxu0 %vm208_vm0, %v478_v31  ;;  %v477_v33 = vsel %vm1400_vm8, %v474_v30, %v456_v29  ;;  %v475_v7 = vsel %vm1418_vm9, %v456_v29, %v474_v30 }
  0xa1   : > { %v178_v34 = vpop.permute.xlu1 %177  ;;  %1149 = vmatpush1.msk.msra.mxu0 %vm208_vm0, %v477_v33  ;;  %v743_v35 = vpop.permute.xlu0 %742 }
  0xa2   : > { %1150 = vmatmul.mubr.msk.f32.vlgmr.msra.gmra.mrb[0].mxu0 %vm204_vm1, %v1147_v32  ;;  %v746_v54 = vsel %vm744_vm11, %v741_v23, %v743_v35 }
  0xa3   : > { %843 = vmatprep.mubr.f32.mxu0 %v1303_v3 }
  0xa5   : > { %v188_v36 = vpop.permute.xlu1 %187  ;;  %v180_v37 = vpop.permute.xlu0 %179 }
  0xa6   : > { %v182_v42 = vsel %vm181_vm4, %v178_v34, %v180_v37  ;;  %v186_v43 = vsel %vm181_vm4, %v180_v37, %v178_v34 }
  0xa9   : > { %v739_v38 = vpop.permute.xlu1 %738  ;;  %v191_v40 = vpop.permute.xlu0 %190 }
  0xaa   : > { %v193_v44 = vsel %vm192_vm6, %v191_v40, %v188_v36  ;;  %v196_v45 = vsel %vm192_vm6, %v188_v36, %v191_v40  ;;  %v750_v57 = vsel %vm181_vm4, %v746_v54, %v739_v38  ;;  %v745_v60 = vsel %vm744_vm11, %v739_v38, %v741_v23 }
  0xab   : > { %v197_v46 = vsel %vm1418_vm9, %v182_v42, %v196_v45  ;;  %v198_v47 = vsel %vm1422_vm10, %v186_v43, %v193_v44  ;;  %v200_v51 = vsel %vm1396_vm7, %v193_v44, %v186_v43  ;;  %v199_v52 = vsel %vm1400_vm8, %v196_v45, %v182_v42 }
  0xac   : > { %1132 = vmatprep.subr.msk.mxu1 %vm208_vm0, %v198_v47 }
  0xad   : > { %v752_v49 = vpop.permute.xlu0 %751  ;;  %1133 = vmatpush1.msk.msra.mxu1 %vm208_vm0, %v197_v46  ;;  %v755_v50 = vpop.permute.xlu1 %754 }
  0xae   : > { %1134 = vmatmul.mubr.msk.f32.vlgmr.msra.gmra.mrb[0].mxu1 %vm204_vm1, %v201_v48  ;;  %1136 = vmatprep.subr.msk.mxu1 %vm208_vm0, %v200_v51 }
  0xaf   : > { %1137 = vmatpush1.msk.msra.mxu1 %vm208_vm0, %v199_v52  ;;  %439 = vmatprep.mubr.f32.mxu1 %v1303_v3 }
  0xb0   : > { %1140 = vmatprep.subr.msk.mxu1 %vm208_vm0, %v476_v53 }
  0xb1   : > { %v757_v55 = vpop.permute.xlu0 %756  ;;  %v857_v56 = vpop.permute.xlu1 %856 }
  0xb2   : > { %v759_v58 = vsel %vm758_vm12, %v755_v50, %v757_v55  ;;  %v760_v59 = vsel %vm758_vm12, %v757_v55, %v752_v49 }
  0xb3   : > { %v763_v61 = vsel %vm192_vm6, %v752_v49, %v759_v58  ;;  %v765_v62 = vsel %vm1422_vm10, %v750_v57, %v760_v59  ;;  %v767_v8 = vsel %vm1396_vm7, %v760_v59, %v750_v57 }
  0xb4   : > { %1152 = vmatprep.subr.msk.mxu0 %vm208_vm0, %v765_v62  ;;  %v764_v1 = vsel %vm1418_vm9, %v745_v60, %v763_v61  ;;  %v766_v11 = vsel %vm1400_vm8, %v763_v61, %v745_v60 }
  0xb5   : > { %1153 = vmatpush1.msk.msra.mxu0 %vm208_vm0, %v764_v1  ;;  %v859_v2 = vpop.permute.xlu0 %858  ;;  %v855_v4 = vpop.permute.xlu1 %854 }
  0xb6   : > { %v862_v5 = vsel %vm860_vm13, %v857_v56, %v859_v2  ;;  %v861_v6 = vsel %vm860_vm13, %v855_v4, %v857_v56  ;;  %1138 = vmatmul.mubr.msk.f32.vlgmr.msra.gmra.mrb[0].mxu1 %vm204_vm1, %v1135_v63  ;;  %1154 = vmatmul.mubr.msk.f32.vlgmr.msra.gmra.mrb[0].mxu0 %vm204_vm1, %v1151_v0 }
  0xb7   : > { %1141 = vmatpush1.msk.msra.mxu1 %vm208_vm0, %v475_v7  ;;  %1156 = vmatprep.subr.msk.mxu0 %vm208_vm0, %v862_v5 }
  0xb8   : > { %1157 = vmatpush1.msk.msra.mxu0 %vm208_vm0, %v861_v6  ;;  %554 = vmatprep.mubr.f32.mxu1 %v1303_v3 }
  0xb9   : > { %1160 = vmatprep.subr.msk.mxu0 %vm208_vm0, %v767_v8  ;;  %934 = vmatprep.mubr.f32.mxu0 %v1303_v3 }
  0xbe   : > { %1142 = vmatmul.mubr.msk.f32.vlgmr.msra.gmra.mrb[0].mxu1 %vm204_vm1, %v1139_v9  ;;  %1158 = vmatmul.mubr.msk.f32.vlgmr.msra.gmra.mrb[0].mxu0 %vm204_vm1, %v1155_v10 }
  0xbf   : > { %1161 = vmatpush1.msk.msra.mxu0 %vm208_vm0, %v766_v11  ;;  %1018 = vmatprep.mubr.f32.mxu0 %v1303_v3 }
  0xc6   : > { %1162 = vmatmul.mubr.msk.f32.vlgmr.msra.gmra.mrb[0].mxu0 %vm204_vm1, %v1159_v12 }
 0x191   : > { %v556_v13 = vpop.f32.mrb[0].mxu1 }
 0x192   : > { %v558_v14 = vpop.f32.mrb[1].mxu1 }
 0x199   : > { %v1020_v15 = vpop.f32.mrb[0].mxu0 }
 0x19a   : > { %v1169_v16 = vadd.f32 %v1020_v15, %v556_v13  ;;  %v1022_v17 = vpop.f32.mrb[1].mxu0 }
 0x19b   : > { %v1170_v18 = vadd.f32 %v1022_v17, %v558_v14 }
 0x19d   : > { %v1027_v19 = vadd.f32 %v1170_v18, %v1169_v16 }
 0x19f   : > { %1028 = vadd.xlane.f32.xlu0 %v1027_v19 }
 0x22c   : > { %v1029_v20 = vpop.xlane.xlu0 %1028 }
 0x22d   : > { %v1031_v21 = vmul.f32 0.00390625, %v1029_v20 }
 0x22f   : > { %v1032_v22 = vsub.f32 %v1169_v16, %v1031_v21  ;;  %v1033_v3 = vsub.f32 %v1170_v18, %v1031_v21 }
 0x231   : > { %v1034_v23 = vmul.f32 %v1032_v22, %v1032_v22  ;;  %v1035_v24 = vmul.f32 %v1033_v3, %v1033_v3 }
 0x233   : > { %v1036_v25 = vadd.f32 %v1035_v24, %v1034_v23 }
 0x235   : > { %1037 = vadd.xlane.f32.xlu1 %v1036_v25 }
 0x2c2   : > { %v1038_v26 = vpop.xlane.xlu1 %1037 }
 0x2c3   : > { %v1039_v27 = vmul.f32 0.00390625, %v1038_v26 }
 0x2c5   : > { %v1040_v28 = vadd.f32 1e-05, %v1039_v27 }
 0x2c7   : > { %1235 = vrsqrt.f32 %v1040_v28 }
 0x2d1   : > { %v1236_v29 = vpop.eup %1235 }
 0x2d2   : > { %v1042_v30 = vmul.f32 %v1236_v29, %v1032_v22  ;;  %v1043_v31 = vmul.f32 %v1236_v29, %v1033_v3 }
 0x2d4   : > { %v1044_v32 = vmax.f32 %v1042_v30, 0.0  ;;  %v1045_v33 = vmax.f32 %v1043_v31, 0.0 }
 0x2d6   : > { %1046 = vst [vmem:[%s136_s8] sm:$0xff] %v1044_v32  ;;  %1047 = vst [vmem:[%s136_s8 + $0x8] sm:$0xff] %v1045_v33 }
 0x2d7   : > { %1250 = shalt.err (!%p1247_p3)
}
 0x2d8   : > { %s1251_s26 = scalar_lea.hbm %s1497_s21, 256  ;;  %s1255_s29 = scalar_lea.hbm %s1541_s2, 512 }
 0x2d9   : > { %p1252_p4 = scmp.ne.s32.totalorder %s1497_s21, %s1251_s26  ;;  %p1256_p9 = scmp.lt.u32.totalorder %s1497_s21, %s1541_s2 }
 0x2da   : > { %p1257_p10 = scmp.lt.u32.totalorder %s1255_s29, %s1251_s26  ;;  %p1259_p12 = scmp.lt.u32.totalorder %s1251_s26, %s1497_s21 }
 0x2db   : > { %p1253_p7 = pnand %p1252_p4, %p1364_p5 }
 0x2dc   : > { %p1258_p11 = por %p1257_p10, %p1256_p9 }
 0x2dd   : > { %p1254_p8 = pneg %p1253_p7 }
 0x2de   : > { %p1260_p13 = por %p1259_p12, %p1258_p11 }
 0x2e0   : > { %p1261_p0 = pnand %p1260_p13, %p1254_p8 }
 0x2e2   : > { %1264 = shalt.err (!%p1261_p0)
}
 0x2e3   : > { %1186 = dma.vmem_to_hbm [thread:$0]  (%p1364_p5), %s1499_s14, 256, %s1497_s21, %s1049_s22  }
 0x2e4 PF: > { %p1192_p1 = scmp.ge.s32.totalorder %s1299_s12, 2  ;;  %s1075_s4 = sand.u32 1, %s1287_s9  }
 0x2e5   : > { %s1076_s5 = scalar_lea.sflag [#allocation3], %s1075_s4 }
 0x2e6   : > { %p1189_p2 = pnand %p1192_p1, %p1368_p6 }
 0x2e8   : > { %1282 = dma.done.wait (!%p1189_p2), %s1076_s5, 256  }
 0x2e9   : > { %1284 = vsyncadd (!%p1189_p2), %s1076_s5, 4294967040  ;;  %p12_p3 = scmp.ge.s32.totalorder %s1351_s15, 4   ;;  %s1552_s9 = smov %s1291_s10 }
 0x2ea   : > { %s1553_s10 = smov %s1295_s11  ;;  %s1554_s11 = smov %s1362_s18 }
 0x2eb   : > { %s1555_s12 = smov %s1351_s15  ;;  %14 = sbr.rel (!%p12_p3) target bundleno = 3 (0x3), region = 71 }
 0x2f2   :  { %1081 = vsyncpa [#allocation3], 1 }
 0x2f3   :  { %1083 = vsyncpa [#allocation3 + $0x1], 1 }

</bundles_post_ra>
